<compile_context>
chip_gen: v5e
topology: v5e:2x2
jax: 0.10.0
libtpu: 0.0.40
codegen_flags: <defaults>
</compile_context>

<pallas_src>
import functools

import jax
import jax.numpy as jnp
from jax.experimental import pallas as pl
from jax.experimental.pallas import tpu as pltpu


def _ls_ce_kernel_full(pred_ref, tgt_ref, out_ref, *, smoothing):
    """Row tile with the full class axis resident: per-row smoothed CE loss."""
    x = pred_ref[...]                                    # (tn, C), input dtype
    tn, c = x.shape
    xf = x.astype(jnp.float32)

    # Smoothed "true distribution" as per-class weights, built from a (1, C)
    # iota broadcast against the (tn, 1) targets (no (tn, C) iota / one-hot).
    col = jax.lax.broadcasted_iota(jnp.int32, (1, c), 1)
    on_val = jnp.float32(1.0 - smoothing)
    off_val = jnp.float32(smoothing / (c - 1))
    w = jnp.where(col == tgt_ref[...], on_val, off_val)  # (tn, C) f32

    # loss = logsumexp(x) - sum(w * x)   (sum(w) == 1); one weighted reduce.
    m = jnp.max(xf, axis=1, keepdims=True)
    lse = m + jnp.log(jnp.sum(jnp.exp(xf - m), axis=1, keepdims=True))
    wsum = jnp.sum(w * xf, axis=1, keepdims=True)

    # Padded rows of a ragged last row tile hold undefined data, but every op
    # here is row-independent and Pallas drops their writeback -> no mask.
    out_ref[...] = lse - wsum


def _ls_ce_kernel_ctiled(pred_ref, tgt_ref, out_ref, m_sc, l_sc, s_sc, *,
                         smoothing, n_classes):
    """Class-tiled variant: online logsumexp + running weighted sum."""
    kk = pl.program_id(1)
    num_k = pl.num_programs(1)

    @pl.when(kk == 0)
    def _():
        m_sc[...] = jnp.full_like(m_sc, -jnp.inf)
        l_sc[...] = jnp.zeros_like(l_sc)
        s_sc[...] = jnp.zeros_like(s_sc)

    x = pred_ref[...]                                    # (tn, tc)
    tn, tc = x.shape
    xf = x.astype(jnp.float32)

    col = kk * tc + jax.lax.broadcasted_iota(jnp.int32, (1, tc), 1)
    on_val = jnp.float32(1.0 - smoothing)
    off_val = jnp.float32(smoothing / (n_classes - 1))
    w = jnp.where(col == tgt_ref[...], on_val, off_val)  # (tn, tc) f32

    def update(x_lse, wx):
        m_prev = m_sc[...]
        m_new = jnp.maximum(m_prev, jnp.max(x_lse, axis=1, keepdims=True))
        l_sc[...] = (jnp.exp(m_prev - m_new) * l_sc[...]
                     + jnp.sum(jnp.exp(x_lse - m_new), axis=1, keepdims=True))
        s_sc[...] = s_sc[...] + jnp.sum(wx, axis=1, keepdims=True)
        m_sc[...] = m_new

    if n_classes % tc == 0:
        update(xf, w * xf)
    else:
        # Only the ragged last class tile pays for column masking.
        @pl.when(kk < num_k - 1)
        def _():
            update(xf, w * xf)

        @pl.when(kk == num_k - 1)
        def _():
            valid = col < n_classes
            update(jnp.where(valid, xf, -jnp.inf),
                   jnp.where(valid, w * xf, 0.0))

    @pl.when(kk == num_k - 1)
    def _():
        out_ref[...] = m_sc[...] + jnp.log(l_sc[...]) - s_sc[...]


def _vmem_config():
    """Generation-aware scoped-VMEM limit and double-buffered tile budget."""
    try:
        cap = int(pltpu.get_tpu_info().vmem_capacity_bytes)
    except Exception:  # pragma: no cover - conservative (v7x-sized) fallback
        cap = 64 * 1024 * 1024
    vmem_limit = min(64 * 1024 * 1024, (cap * 3) // 4)   # 48 MiB v7x, 64 MiB v5e/v6e
    tile_budget = cap // 4                               # 16 MiB v7x, 32 MiB v5e/v6e
    return vmem_limit, tile_budget


def _rows_for(cols, itemsize, budget_bytes, n_pad):
    # Per grid step: double-buffered logits (tn, cols) plus the narrow
    # (tn, 1) targets / per-row-loss blocks, which lane-pad to (8, 128) VMEM
    # tiles (~512 B per row each); plus ~4 f32 class-axis temporaries
    # (cast, weights, w*x, exp) and the (tn, 1) f32 scratch accumulators.
    dma_per_row = 2 * (cols * itemsize + 512 + 512)
    tmp_per_row = 4 * cols * 4 + 3 * 512
    tn = budget_bytes // (dma_per_row + tmp_per_row)
    tn = max(8, min(int(tn), 4096, n_pad))
    return (tn // 8) * 8


def label_smoothing_cross_entropy(predictions, targets, smoothing=0.1,
                                  tile_n=None, tile_c=None):
    """predictions: (N, C) float; targets: (N,) int. Returns scalar f32 mean."""
    n, c = predictions.shape
    vmem_limit, tile_budget = _vmem_config()
    itemsize = predictions.dtype.itemsize
    n_pad = pl.cdiv(n, 8) * 8

    if tile_c is None:
        # Keep the whole class axis in one block unless that forces tiny row
        # tiles (vocab-scale C); then tile the class axis too.
        if _rows_for(c, itemsize, tile_budget, n_pad) >= min(128, n_pad):
            tile_c = c
        else:
            tile_c = 512
    tile_c = min(tile_c, c)
    if tile_n is None:
        tile_n = _rows_for(tile_c, itemsize, tile_budget, n_pad)

    tgt2d = targets.astype(jnp.int32).reshape(n, 1)
    out_shape = jax.ShapeDtypeStruct((n, 1), jnp.float32)

    if tile_c == c:
        kernel = functools.partial(_ls_ce_kernel_full, smoothing=float(smoothing))
        row_losses = pl.pallas_call(
            kernel,
            out_shape=out_shape,
            grid_spec=pltpu.PrefetchScalarGridSpec(
                num_scalar_prefetch=0,
                grid=(pl.cdiv(n, tile_n),),
                in_specs=[
                    pl.BlockSpec((tile_n, c), lambda i: (i, 0)),   # logits tile
                    pl.BlockSpec((tile_n, 1), lambda i: (i, 0)),   # targets
                ],
                out_specs=pl.BlockSpec((tile_n, 1), lambda i: (i, 0)),
            ),
            compiler_params=pltpu.CompilerParams(
                dimension_semantics=("parallel",),
                vmem_limit_bytes=vmem_limit,
            ),
        )(predictions, tgt2d)
    else:
        kernel = functools.partial(_ls_ce_kernel_ctiled,
                                   smoothing=float(smoothing), n_classes=c)
        row_losses = pl.pallas_call(
            kernel,
            out_shape=out_shape,
            grid_spec=pltpu.PrefetchScalarGridSpec(
                num_scalar_prefetch=0,
                grid=(pl.cdiv(n, tile_n), pl.cdiv(c, tile_c)),
                in_specs=[
                    pl.BlockSpec((tile_n, tile_c), lambda i, k: (i, k)),
                    pl.BlockSpec((tile_n, 1), lambda i, k: (i, 0)),
                ],
                out_specs=pl.BlockSpec((tile_n, 1), lambda i, k: (i, 0)),
                scratch_shapes=[pltpu.VMEM((tile_n, 1), jnp.float32)] * 3,
            ),
            compiler_params=pltpu.CompilerParams(
                dimension_semantics=("parallel", "arbitrary"),
                vmem_limit_bytes=vmem_limit,
            ),
        )(predictions, tgt2d)

    # Tiny final reduction (N floats) in XLA.
    return jnp.sum(row_losses) / jnp.float32(n)


def _reference(predictions, targets, smoothing=0.1):
    n, c = predictions.shape
    lp = jax.nn.log_softmax(predictions.astype(jnp.float32), axis=1)
    true_dist = jnp.full((n, c), smoothing / (c - 1), jnp.float32)
    true_dist = true_dist.at[jnp.arange(n), targets].set(1.0 - smoothing)
    return jnp.mean(jnp.sum(-true_dist * lp, axis=1))


if __name__ == "__main__":
    key = jax.random.PRNGKey(0)
    k1, k2, k3, k4, k5, k6 = jax.random.split(key, 6)

    # Case 1: small (N, C) matching the module's 2-D forward; full-class path.
    N, C = 8, 32
    predictions = jax.random.normal(k1, (N, C), dtype=jnp.float32)
    targets = jax.random.randint(k2, (N,), 0, C, dtype=jnp.int32)
    loss = jax.block_until_ready(
        label_smoothing_cross_entropy(predictions, targets, smoothing=0.1))
    ref = _reference(predictions, targets, smoothing=0.1)
    assert jnp.allclose(loss, ref, atol=1e-4, rtol=1e-5), (loss, ref)

    # Case 2: ragged batch (N % tile_n != 0) on the full-class path.
    N2, C2 = 20, 48
    predictions2 = jax.random.normal(k3, (N2, C2), dtype=jnp.float32)
    targets2 = jax.random.randint(k4, (N2,), 0, C2, dtype=jnp.int32)
    loss2 = jax.block_until_ready(
        label_smoothing_cross_entropy(predictions2, targets2, smoothing=0.1,
                                      tile_n=8))
    ref2 = _reference(predictions2, targets2, smoothing=0.1)
    assert jnp.allclose(loss2, ref2, atol=1e-4, rtol=1e-5), (loss2, ref2)

    # Case 3: class-tiled (online logsumexp) path with ragged rows AND a
    # ragged last class tile.
    N3, C3 = 24, 200
    predictions3 = jax.random.normal(k5, (N3, C3), dtype=jnp.float32)
    targets3 = jax.random.randint(k6, (N3,), 0, C3, dtype=jnp.int32)
    loss3 = jax.block_until_ready(
        label_smoothing_cross_entropy(predictions3, targets3, smoothing=0.1,
                                      tile_n=16, tile_c=128))
    ref3 = _reference(predictions3, targets3, smoothing=0.1)
    assert jnp.allclose(loss3, ref3, atol=1e-4, rtol=1e-5), (loss3, ref3)

    print("KERNEL_OK")
</pallas_src>

<mosaic_0001>
module attributes {stable_mosaic.version = 11 : i64} {
  func.func @_ls_ce_kernel_full(%arg0: i32, %arg1: memref<8x32xf32, #tpu.memory_space<vmem>>, %arg2: memref<8x1xi32, #tpu.memory_space<vmem>>, %arg3: memref<8x1xf32, #tpu.memory_space<vmem>>) attributes {dimension_semantics = [#tpu.dimension_semantics<parallel>], iteration_bounds = array<i64: 1>, scalar_prefetch = 0 : i64, scratch_operands = 0 : i64, tpu.core_type = #tpu.core_type<tc>, window_params = [{transform_indices = @transform_0, window_bounds = array<i64: 8, 32>}, {transform_indices = @transform_1, window_bounds = array<i64: 8, 1>}, {transform_indices = @transform_2, window_bounds = array<i64: 8, 1>}]} {
    %c0 = arith.constant 0 : index
    %c0_0 = arith.constant 0 : index
    %0 = vector.load %arg1[%c0, %c0_0] : memref<8x32xf32, #tpu.memory_space<vmem>>, vector<8x32xf32>
    %1 = tpu.iota {dimensions = array<i32: 1>} : vector<1x32xi32>
    %c0_1 = arith.constant 0 : index
    %c0_2 = arith.constant 0 : index
    %2 = vector.load %arg2[%c0_1, %c0_2] : memref<8x1xi32, #tpu.memory_space<vmem>>, vector<8x1xi32>
    %3 = vector.broadcast %1 : vector<1x32xi32> to vector<8x32xi32>
    %4 = vector.broadcast %2 : vector<8x1xi32> to vector<8x32xi32>
    %5 = arith.cmpi eq, %3, %4 : vector<8x32xi32>
    %cst = arith.constant 0.899999976 : f32
    %cst_3 = arith.constant 0.0032258064 : f32
    %6 = vector.broadcast %cst : f32 to vector<8x32xf32>
    %7 = vector.broadcast %cst_3 : f32 to vector<8x32xf32>
    %8 = arith.select %5, %6, %7 : vector<8x32xi1>, vector<8x32xf32>
    %cst_4 = arith.constant dense<0xFF800000> : vector<8xf32>
    %9 = vector.multi_reduction <maximumf>, %0, %cst_4 [1] : vector<8x32xf32> to vector<8xf32>
    %10 = vector.shape_cast %9 : vector<8xf32> to vector<8x1xf32>
    %11 = vector.broadcast %10 : vector<8x1xf32> to vector<8x32xf32>
    %12 = arith.subf %0, %11 : vector<8x32xf32>
    %13 = math.exp %12 : vector<8x32xf32>
    %cst_5 = arith.constant dense<0.000000e+00> : vector<8xf32>
    %14 = vector.multi_reduction <add>, %13, %cst_5 [1] : vector<8x32xf32> to vector<8xf32>
    %15 = vector.shape_cast %14 : vector<8xf32> to vector<8x1xf32>
    %16 = math.log %15 : vector<8x1xf32>
    %17 = arith.addf %10, %16 : vector<8x1xf32>
    %18 = arith.mulf %8, %0 : vector<8x32xf32>
    %cst_6 = arith.constant dense<0.000000e+00> : vector<8xf32>
    %19 = vector.multi_reduction <add>, %18, %cst_6 [1] : vector<8x32xf32> to vector<8xf32>
    %20 = vector.shape_cast %19 : vector<8xf32> to vector<8x1xf32>
    %21 = arith.subf %17, %20 : vector<8x1xf32>
    %c0_7 = arith.constant 0 : index
    %c0_8 = arith.constant 0 : index
    %22 = vector.load %arg3[%c0_7, %c0_8] : memref<8x1xf32, #tpu.memory_space<vmem>>, vector<8x1xf32>
    tpu.vector_store %arg3[%c0_7, %c0_8], %21 {strides = array<i32>} : memref<8x1xf32, #tpu.memory_space<vmem>>, vector<8x1xf32>,
    return
  }
  func.func @transform_0(%arg0: i32) -> (i32, i32) {
    %c0_i32 = arith.constant 0 : i32
    %c0_i32_0 = arith.constant 0 : i32
    return %arg0, %c0_i32 : i32, i32
  }
  func.func @transform_1(%arg0: i32) -> (i32, i32) {
    %c0_i32 = arith.constant 0 : i32
    %c0_i32_0 = arith.constant 0 : i32
    return %arg0, %c0_i32 : i32, i32
  }
  func.func @transform_2(%arg0: i32) -> (i32, i32) {
    %c0_i32 = arith.constant 0 : i32
    %c0_i32_0 = arith.constant 0 : i32
    return %arg0, %c0_i32 : i32, i32
  }
}

</mosaic_0001>

<bundles_post_ra>
// kernel: tpu_custom_call.1
= control target key start
LH: loop header
LB: loop body
LE: loop exit
PB: predicated region body
PF: predicated region fallthrough
CT: control target
= control target key end

     0   :  { %vm20_vm0 = vcmask 261120   ;;  %v51_v1 = vmov 0   ;;  %v12_v9 = vlaneseq  ;;  %v52_v12 = vmov 0.0032258064   ;;  %s80_s0 = inlined_call_operand.vmem [shape: f32[8,32], index: 0, kind: input, shape index: {}]   ;;  %s81_s1 = inlined_call_operand.vmem [shape: s32[8,1], index: 1, kind: input, shape index: {}]   ;;  %s82_s2 = inlined_call_operand.vmem [shape: f32[8,1], index: 2, kind: output, shape index: {}]  }
   0x1   :  { %v11_v0 = vld [vmem:[%s80_s0] sm:$0xff]  ;;  %46 = vset.pattern.permute.xlu0 %v51_v1  ;;  %vm38_vm2 = vcmask 7168  }
   0x2   :  { %v21_v2 = vsel %vm20_vm0, %v11_v0, -inf  ;;  %v14_v3 = vld [vmem:[%s81_s1] sm:$0xff]  ;;  %v13_v10 = vand.u32 127, %v12_v9 }
   0x3   :  { %22 = vmax.xlane.f32.xlu0 %v21_v2 }
  0x17   :  { %16 = vperm.xlu0 %46, %v14_v3  }
  0x76   :  { %v23_v4 = vpop.xlane.xlu0 %22 }
  0x77   :  { %v24_v5 = vsub.f32 %v11_v0, %v23_v4 }
  0x79   :  { %v25_v6 = vmul.f32 1.442695, %v24_v5 }
  0x7b   :  { %47 = vpow2.f32 %v25_v6 }
  0x81   :  { %v48_v7 = vpop.eup %47 }
  0x82   :  { %v27_v8 = vsel %vm20_vm0, %v48_v7, 0.0 }
  0x83   :  { %28 = vadd.xlane.f32.xlu1 %v27_v8 }
  0x89   :  { %v17_v11 = vpop.permute.xlu0 %16 }
  0x8a   :  { %vm18_vm1 = vcmp.eq.s32.totalorder %v13_v10, %v17_v11 }
  0x8b   :  { %v19_v13 = vsel %vm18_vm1, 0.9, %v52_v12 }
  0x8c   :  { %v33_v14 = vmul.f32 %v19_v13, %v11_v0 }
  0x8e   :  { %v34_v15 = vsel %vm20_vm0, %v33_v14, 0.0 }
  0x8f   :  { %35 = vadd.xlane.f32.xlu1 %v34_v15 }
  0xf6   :  { %v29_v16 = vpop.xlane.xlu1 %28 }
  0xf7   :  { %49 = vlog2.f32 %v29_v16 }
  0xfd   :  { %v50_v17 = vpop.eup %49 }
  0xfe   :  { %v31_v18 = vmul.f32 0.6931472, %v50_v17 }
 0x100   :  { %v32_v19 = vadd.f32 %v31_v18, %v23_v4 }
 0x102   :  { %v36_v20 = vpop.xlane.xlu1 %35 }
 0x103   :  { %v37_v21 = vsub.f32 %v32_v19, %v36_v20 }
 0x105   :  { %39 = vst.msk [vmem:[%s82_s2] sm:$0xff] %vm38_vm2, %v37_v21 }

</bundles_post_ra>
